<compile_context>
chip_gen: v5e
topology: v5e:2x2
jax: 0.10.0
libtpu: 0.0.40
codegen_flags: <defaults>
</compile_context>

<pallas_src>
import jax
import jax.numpy as jnp
from jax.experimental import pallas as pl
from jax.experimental.pallas import tpu as pltpu

PMU_for_training = 2
PMU_selection_len = 10
X_TRAIN_DATASIZE = 2 * PMU_selection_len * PMU_for_training  # 40
H = 60
OUT = 2

PAD = 128          # lane-padded width for features / hidden / output
N_LAYERS = 4
BIAS_ROWS = 8      # bias slab padded to a full (8,128) sublane tile
ROW_ALIGN = 16     # bf16 sublane packing -> keep batch tiles 16-row aligned


def _cdiv(a, b):
    return (a + b - 1) // b


def _round_up(n, m):
    return _cdiv(n, m) * m


def mlp_kernel(x_ref, w_ref, b_ref, o_ref, xpad_ref):
    # x_ref:   (TB, 40)      f32
    # w_ref:   (4, 128, 128) bf16
    # b_ref:   (8, 128)      f32
    # o_ref:   (TB, 128)     bf16  (only the first 2 lanes are meaningful)
    # xpad_ref:(TB, 128)     bf16  VMEM scratch
    bf16 = jnp.bfloat16

    # Fused lane-pad (40 -> 128) + bf16 cast of the input tile.
    xpad_ref[...] = jnp.zeros_like(xpad_ref)
    xpad_ref[:, :X_TRAIN_DATASIZE] = x_ref[...].astype(bf16)

    # linear1 (no activation, matching the PyTorch forward)
    y = jnp.dot(xpad_ref[...], w_ref[0],
                preferred_element_type=jnp.float32) + b_ref[0:1, :]

    # relu(linear2)
    y = jnp.maximum(
        jnp.dot(y.astype(bf16), w_ref[1],
                preferred_element_type=jnp.float32) + b_ref[1:2, :], 0.0)

    # relu(linear3)
    y = jnp.maximum(
        jnp.dot(y.astype(bf16), w_ref[2],
                preferred_element_type=jnp.float32) + b_ref[2:3, :], 0.0)

    # relu(linear4); the extra final relu in the PyTorch forward is idempotent
    y = jnp.maximum(
        jnp.dot(y.astype(bf16), w_ref[3],
                preferred_element_type=jnp.float32) + b_ref[3:4, :], 0.0)

    # bf16 lane-dense writeback (half the HBM write of f32).
    o_ref[...] = y.astype(o_ref.dtype)


def pack_params(params):
    """Zero-pad each layer to (128,128)/(128,) and pack into two slabs."""
    ws, bs = [], []
    for i in range(N_LAYERS):
        w, b = params[2 * i], params[2 * i + 1]          # w: (in,out), b: (1,out)
        wp = jnp.zeros((PAD, PAD), jnp.float32).at[:w.shape[0], :w.shape[1]].set(w)
        bp = jnp.zeros((PAD,), jnp.float32).at[:b.shape[1]].set(b[0])
        ws.append(wp)
        bs.append(bp)
    w_slab = jnp.stack(ws).astype(jnp.bfloat16)                       # (4,128,128) bf16
    b_slab = jnp.zeros((BIAS_ROWS, PAD), jnp.float32).at[:N_LAYERS].set(jnp.stack(bs))
    return w_slab, b_slab


def _choose_tiling(B):
    """Pick (batch_tile TB, padded batch Bp). 16-row aligned, minimal waste."""
    b = _round_up(max(B, ROW_ALIGN), ROW_ALIGN)
    if b <= 512:
        n = 1                     # tiny/latency regime: single tile
    elif b <= 2048:
        n = 2                     # >=2 grid steps -> both v7x TensorCores busy
    else:
        n = _cdiv(b, 1024)        # ~1024-row tiles: amortize per-step overhead
    TB = _round_up(_cdiv(b, n), ROW_ALIGN)
    return TB, n * TB


def network_forward(x, w_slab, b_slab):
    """x: (B, 40) float32 -> (B, 2) float32"""
    B, F = x.shape
    TB, Bp = _choose_tiling(B)

    # Only cheap batch-row padding in the wrapper; keep f32 and 40 lanes.
    if Bp != B:
        xp = jnp.zeros((Bp, F), x.dtype).at[:B].set(x)
    else:
        xp = x

    out = pl.pallas_call(
        mlp_kernel,
        out_shape=jax.ShapeDtypeStruct((Bp, PAD), jnp.bfloat16),
        grid=(Bp // TB,),
        in_specs=[
            pl.BlockSpec((TB, F), lambda i: (i, 0)),                  # x tile (f32, 40-wide)
            pl.BlockSpec((N_LAYERS, PAD, PAD), lambda i: (0, 0, 0)),  # weight slab
            pl.BlockSpec((BIAS_ROWS, PAD), lambda i: (0, 0)),         # bias slab
        ],
        out_specs=pl.BlockSpec((TB, PAD), lambda i: (i, 0)),          # lane-dense bf16 out
        scratch_shapes=[pltpu.VMEM((TB, PAD), jnp.bfloat16)],         # padded-x scratch
        compiler_params=pltpu.CompilerParams(
            dimension_semantics=("parallel",)),
    )(xp, w_slab, b_slab)

    return out[:B, :OUT].astype(jnp.float32)


def init_params(key):
    """nn.Linear-style init; weights stored as (in_features, out_features)."""
    def linear(key, fan_in, fan_out):
        kw, kb = jax.random.split(key)
        bound = 1.0 / jnp.sqrt(fan_in)
        w = jax.random.uniform(kw, (fan_in, fan_out), jnp.float32, -bound, bound)
        b = jax.random.uniform(kb, (1, fan_out), jnp.float32, -bound, bound)
        return w, b

    k1, k2, k3, k4 = jax.random.split(key, 4)
    w1, b1 = linear(k1, X_TRAIN_DATASIZE, H)
    w2, b2 = linear(k2, H, H)
    w3, b3 = linear(k3, H, H)
    w4, b4 = linear(k4, H, OUT)
    return (w1, b1, w2, b2, w3, b3, w4, b4)


def reference_forward_f32(x, params):
    (w1, b1, w2, b2, w3, b3, w4, b4) = params
    y = x @ w1 + b1
    y = jax.nn.relu(y @ w2 + b2)
    y = jax.nn.relu(y @ w3 + b3)
    y = jax.nn.relu(y @ w4 + b4)
    return jax.nn.relu(y)


def reference_forward_bf16(x, params):
    """Mirrors the kernel's bf16-operand / f32-accumulate / bf16-store math."""
    (w1, b1, w2, b2, w3, b3, w4, b4) = params
    c = lambda a: a.astype(jnp.bfloat16)
    dot = lambda a, w: jnp.dot(c(a), c(w), preferred_element_type=jnp.float32)
    y = dot(x, w1) + b1
    y = jax.nn.relu(dot(y, w2) + b2)
    y = jax.nn.relu(dot(y, w3) + b3)
    y = jax.nn.relu(dot(y, w4) + b4)
    y = jax.nn.relu(y)
    return y.astype(jnp.bfloat16).astype(jnp.float32)   # bf16 writeback


if __name__ == "__main__":
    key = jax.random.PRNGKey(0)
    kx, kp = jax.random.split(key)

    B = 8
    x = jax.random.normal(kx, (B, X_TRAIN_DATASIZE), dtype=jnp.float32)
    params = init_params(kp)
    w_slab, b_slab = pack_params(params)

    out = network_forward(x, w_slab, b_slab)
    out = jax.block_until_ready(out)
    assert out.shape == (B, OUT)

    # Check against a JAX reference mirroring the kernel's bf16/f32 math.
    ref_bf16 = reference_forward_bf16(x, params)
    assert jnp.allclose(out, ref_bf16, atol=1e-2, rtol=1e-2)

    # Loose semantic check against the full-precision f32 forward.
    ref_f32 = reference_forward_f32(x, params)
    assert jnp.allclose(out, ref_f32, atol=5e-2, rtol=5e-2)

    # Exercise the row-padding / adaptive-tiling path with a non-aligned batch.
    B2 = 20
    x2 = jax.random.normal(jax.random.PRNGKey(1), (B2, X_TRAIN_DATASIZE),
                           dtype=jnp.float32)
    out2 = jax.block_until_ready(network_forward(x2, w_slab, b_slab))
    assert out2.shape == (B2, OUT)
    assert jnp.allclose(out2, reference_forward_bf16(x2, params),
                        atol=1e-2, rtol=1e-2)

    print("KERNEL_OK")
</pallas_src>

<mosaic_0001>
module attributes {stable_mosaic.version = 11 : i64} {
  func.func @mlp_kernel(%arg0: i32, %arg1: memref<16x40xf32, #tpu.memory_space<vmem>>, %arg2: memref<4x128x128xbf16, #tpu.memory_space<vmem>>, %arg3: memref<8x128xf32, #tpu.memory_space<vmem>>, %arg4: memref<16x128xbf16, #tpu.memory_space<vmem>>, %arg5: memref<16x128xbf16, #tpu.memory_space<vmem>>) attributes {dimension_semantics = [#tpu.dimension_semantics<parallel>], iteration_bounds = array<i64: 1>, scalar_prefetch = 0 : i64, scratch_operands = 1 : i64, tpu.core_type = #tpu.core_type<tc>, window_params = [{transform_indices = @transform_0, window_bounds = array<i64: 16, 40>}, {pipeline_mode = #tpu.pipeline_mode<synchronous>, transform_indices = @transform_1, window_bounds = array<i64: 4, 128, 128>}, {pipeline_mode = #tpu.pipeline_mode<synchronous>, transform_indices = @transform_2, window_bounds = array<i64: 8, 128>}, {transform_indices = @transform_3, window_bounds = array<i64: 16, 128>}]} {
    %cst = arith.constant 0.000000e+00 : bf16
    %0 = vector.broadcast %cst : bf16 to vector<16x128xbf16>
    %c0 = arith.constant 0 : index
    %c0_0 = arith.constant 0 : index
    %1 = vector.load %arg5[%c0, %c0_0] : memref<16x128xbf16, #tpu.memory_space<vmem>>, vector<16x128xbf16>
    tpu.vector_store %arg5[%c0, %c0_0], %0 {strides = array<i32>} : memref<16x128xbf16, #tpu.memory_space<vmem>>, vector<16x128xbf16>,
    %c0_1 = arith.constant 0 : index
    %c0_2 = arith.constant 0 : index
    %2 = vector.load %arg1[%c0_1, %c0_2] : memref<16x40xf32, #tpu.memory_space<vmem>>, vector<16x40xf32>
    %3 = arith.truncf %2 : vector<16x40xf32> to vector<16x40xbf16>
    %c0_3 = arith.constant 0 : index
    %c0_4 = arith.constant 0 : index
    %4 = vector.load %arg5[%c0_3, %c0_4] : memref<16x128xbf16, #tpu.memory_space<vmem>>, vector<16x40xbf16>
    tpu.vector_store %arg5[%c0_3, %c0_4], %3 {strides = array<i32>} : memref<16x128xbf16, #tpu.memory_space<vmem>>, vector<16x40xbf16>,
    %c0_5 = arith.constant 0 : index
    %c0_6 = arith.constant 0 : index
    %5 = vector.load %arg5[%c0_5, %c0_6] : memref<16x128xbf16, #tpu.memory_space<vmem>>, vector<16x128xbf16>
    %c0_7 = arith.constant 0 : index
    %c0_8 = arith.constant 0 : index
    %c0_9 = arith.constant 0 : index
    %6 = vector.load %arg2[%c0_7, %c0_8, %c0_9] : memref<4x128x128xbf16, #tpu.memory_space<vmem>>, vector<1x128x128xbf16>
    %7 = vector.shape_cast %6 : vector<1x128x128xbf16> to vector<128x128xbf16>
    %cst_10 = arith.constant dense<0.000000e+00> : vector<16x128xf32>
    %8 = tpu.matmul %5, %7, %cst_10 {dimension_numbers = #tpu.dot_dimension_numbers<[1], [0], [0], [1], [0, 0, 1, 1], [], []>} : vector<16x128xbf16>, vector<128x128xbf16>, vector<16x128xf32> -> vector<16x128xf32>
    %c0_11 = arith.constant 0 : index
    %c0_12 = arith.constant 0 : index
    %9 = vector.load %arg3[%c0_11, %c0_12] : memref<8x128xf32, #tpu.memory_space<vmem>>, vector<1x128xf32>
    %10 = vector.broadcast %9 : vector<1x128xf32> to vector<16x128xf32>
    %11 = arith.addf %8, %10 : vector<16x128xf32>
    %12 = arith.truncf %11 : vector<16x128xf32> to vector<16x128xbf16>
    %c1 = arith.constant 1 : index
    %c0_13 = arith.constant 0 : index
    %c0_14 = arith.constant 0 : index
    %13 = vector.load %arg2[%c1, %c0_13, %c0_14] : memref<4x128x128xbf16, #tpu.memory_space<vmem>>, vector<1x128x128xbf16>
    %14 = vector.shape_cast %13 : vector<1x128x128xbf16> to vector<128x128xbf16>
    %cst_15 = arith.constant dense<0.000000e+00> : vector<16x128xf32>
    %15 = tpu.matmul %12, %14, %cst_15 {dimension_numbers = #tpu.dot_dimension_numbers<[1], [0], [0], [1], [0, 0, 1, 1], [], []>} : vector<16x128xbf16>, vector<128x128xbf16>, vector<16x128xf32> -> vector<16x128xf32>
    %c1_16 = arith.constant 1 : index
    %c0_17 = arith.constant 0 : index
    %16 = vector.load %arg3[%c1_16, %c0_17] : memref<8x128xf32, #tpu.memory_space<vmem>>, vector<1x128xf32>
    %17 = vector.broadcast %16 : vector<1x128xf32> to vector<16x128xf32>
    %18 = arith.addf %15, %17 : vector<16x128xf32>
    %cst_18 = arith.constant 0.000000e+00 : f32
    %19 = vector.broadcast %cst_18 : f32 to vector<16x128xf32>
    %20 = arith.maximumf %18, %19 : vector<16x128xf32>
    %21 = arith.truncf %20 : vector<16x128xf32> to vector<16x128xbf16>
    %c2 = arith.constant 2 : index
    %c0_19 = arith.constant 0 : index
    %c0_20 = arith.constant 0 : index
    %22 = vector.load %arg2[%c2, %c0_19, %c0_20] : memref<4x128x128xbf16, #tpu.memory_space<vmem>>, vector<1x128x128xbf16>
    %23 = vector.shape_cast %22 : vector<1x128x128xbf16> to vector<128x128xbf16>
    %cst_21 = arith.constant dense<0.000000e+00> : vector<16x128xf32>
    %24 = tpu.matmul %21, %23, %cst_21 {dimension_numbers = #tpu.dot_dimension_numbers<[1], [0], [0], [1], [0, 0, 1, 1], [], []>} : vector<16x128xbf16>, vector<128x128xbf16>, vector<16x128xf32> -> vector<16x128xf32>
    %c2_22 = arith.constant 2 : index
    %c0_23 = arith.constant 0 : index
    %25 = vector.load %arg3[%c2_22, %c0_23] : memref<8x128xf32, #tpu.memory_space<vmem>>, vector<1x128xf32>
    %26 = vector.broadcast %25 : vector<1x128xf32> to vector<16x128xf32>
    %27 = arith.addf %24, %26 : vector<16x128xf32>
    %cst_24 = arith.constant 0.000000e+00 : f32
    %28 = vector.broadcast %cst_24 : f32 to vector<16x128xf32>
    %29 = arith.maximumf %27, %28 : vector<16x128xf32>
    %30 = arith.truncf %29 : vector<16x128xf32> to vector<16x128xbf16>
    %c3 = arith.constant 3 : index
    %c0_25 = arith.constant 0 : index
    %c0_26 = arith.constant 0 : index
    %31 = vector.load %arg2[%c3, %c0_25, %c0_26] : memref<4x128x128xbf16, #tpu.memory_space<vmem>>, vector<1x128x128xbf16>
    %32 = vector.shape_cast %31 : vector<1x128x128xbf16> to vector<128x128xbf16>
    %cst_27 = arith.constant dense<0.000000e+00> : vector<16x128xf32>
    %33 = tpu.matmul %30, %32, %cst_27 {dimension_numbers = #tpu.dot_dimension_numbers<[1], [0], [0], [1], [0, 0, 1, 1], [], []>} : vector<16x128xbf16>, vector<128x128xbf16>, vector<16x128xf32> -> vector<16x128xf32>
    %c3_28 = arith.constant 3 : index
    %c0_29 = arith.constant 0 : index
    %34 = vector.load %arg3[%c3_28, %c0_29] : memref<8x128xf32, #tpu.memory_space<vmem>>, vector<1x128xf32>
    %35 = vector.broadcast %34 : vector<1x128xf32> to vector<16x128xf32>
    %36 = arith.addf %33, %35 : vector<16x128xf32>
    %cst_30 = arith.constant 0.000000e+00 : f32
    %37 = vector.broadcast %cst_30 : f32 to vector<16x128xf32>
    %38 = arith.maximumf %36, %37 : vector<16x128xf32>
    %39 = arith.truncf %38 : vector<16x128xf32> to vector<16x128xbf16>
    %c0_31 = arith.constant 0 : index
    %c0_32 = arith.constant 0 : index
    %40 = vector.load %arg4[%c0_31, %c0_32] : memref<16x128xbf16, #tpu.memory_space<vmem>>, vector<16x128xbf16>
    tpu.vector_store %arg4[%c0_31, %c0_32], %39 {strides = array<i32>} : memref<16x128xbf16, #tpu.memory_space<vmem>>, vector<16x128xbf16>,
    return
  }
  func.func @transform_0(%arg0: i32) -> (i32, i32) {
    %c0_i32 = arith.constant 0 : i32
    %c0_i32_0 = arith.constant 0 : i32
    return %arg0, %c0_i32 : i32, i32
  }
  func.func @transform_1(%arg0: i32) -> (i32, i32, i32) {
    %c0_i32 = arith.constant 0 : i32
    %c0_i32_0 = arith.constant 0 : i32
    %c0_i32_1 = arith.constant 0 : i32
    %c0_i32_2 = arith.constant 0 : i32
    return %c0_i32, %c0_i32_0, %c0_i32_1 : i32, i32, i32
  }
  func.func @transform_2(%arg0: i32) -> (i32, i32) {
    %c0_i32 = arith.constant 0 : i32
    %c0_i32_0 = arith.constant 0 : i32
    %c0_i32_1 = arith.constant 0 : i32
    return %c0_i32, %c0_i32_0 : i32, i32
  }
  func.func @transform_3(%arg0: i32) -> (i32, i32) {
    %c0_i32 = arith.constant 0 : i32
    %c0_i32_0 = arith.constant 0 : i32
    return %arg0, %c0_i32 : i32, i32
  }
}

</mosaic_0001>

<bundles_post_ra>
// kernel: tpu_custom_call.1
= control target key start
LH: loop header
LB: loop body
LE: loop exit
PB: predicated region body
PF: predicated region fallthrough
CT: control target
= control target key end

     0   :  { %8 = vsyncpa [#allocation4], 0  ;;  %s766_s0 = inlined_call_operand.hbm [shape: f32[16,40], index: 0, kind: input, shape index: {}]   ;;  %s767_s1 = inlined_call_operand.hbm [shape: bf16[4,128,128], index: 1, kind: input, shape index: {}]   ;;  %s768_s2 = inlined_call_operand.hbm [shape: f32[8,128], index: 2, kind: input, shape index: {}]   ;;  %s769_s3 = inlined_call_operand.hbm [shape: bf16[16,128], index: 3, kind: output, shape index: {}]  }
   0x1   :  { %9 = vsyncpa [#allocation7], 0  ;;  %s28_s14 = sshll.u32 %s767_s1, 4  ;;  %s29_s14 = int_to_ptr.hbm [resolvable:$true] %s28_s14 }
   0x2   :  { %10 = vsyncpa [#allocation5], 0  ;;  %s719_s15 = smov [#allocation6]   ;;  %s15_s19 = sshll.u32 %s766_s0, 4  ;;  %s16_s19 = int_to_ptr.hbm [resolvable:$true] %s15_s19 }
   0x3   :  { %s30_s16 = sshll.u32 %s719_s15, 4  ;;  %s720_s20 = smov 64   ;;  %s31_s16 = int_to_ptr.vmem [resolvable:$true] %s30_s16 }
   0x4   :  { %s721_s21 = smov 4   ;;  %s722_s22 = smov [#allocation3]  }
   0x5   :  { %36 = dma.hbm_to_vmem [thread:$0]  %s29_s14, 4096, %s31_s16, [#allocation7], %s720_s20, %s720_s20, %s721_s21  }
   0x6   :  { %s17_s23 = sshll.u32 %s722_s22, 4  ;;  %s723_s1 = smov 128   ;;  %s18_s23 = int_to_ptr.vmem [resolvable:$true] %s17_s23 }
   0x7   :  { %s724_s24 = smov 8   ;;  %s42_s27 = sshll.u32 %s768_s2, 4  ;;  %s43_s27 = int_to_ptr.hbm [resolvable:$true] %s42_s27 }
   0x8   :  { %23 = dma.hbm_to_vmem [thread:$0]  %s16_s19, 256, %s18_s23, [#allocation4], %s723_s1, %s723_s1, %s724_s24  }
   0x9   :  { %s725_s28 = smov [#allocation8]  }
   0xa   :  { %s44_s0 = sshll.u32 %s725_s28, 4  ;;  %s45_s0 = int_to_ptr.vmem [resolvable:$true] %s44_s0 }
   0xb   :  { %47 = dma.hbm_to_vmem [thread:$0]  %s43_s27, 128, %s45_s0, [#allocation7]  }
   0xc   :  { %713 = dma.done.wait [#allocation4], 256  }
   0xd   :  { %714 = vsyncadd [#allocation4], 4294967040 }
   0xe   :  { %715 = dma.done.wait [#allocation7], 4224  }
   0xf   :  { %716 = vsyncadd [#allocation7], 4294963072  ;;  %v726_v0 = vmov 0   ;;  %v574_v1 = vld [vmem:[#allocation6 + $0x38] sm:$0xff]  ;;  %v573_v2 = vld [vmem:[#allocation6 + $0x30] sm:$0xff]  ;;  %vm67_vm0 = vcmask 322560  }
  0x10   :  { %61 = vst [vmem:[#allocation2] sm:$0xf] %v726_v0  ;;  %144 = vmatpush.bf16.msra.mxu0 %v574_v1  ;;  %v63_v3 = vld [vmem:[#allocation3] sm:$0xff]  ;;  %v64_v4 = vld [vmem:[#allocation3 + $0x8] sm:$0xff]  ;;  %v572_v8 = vld [vmem:[#allocation6 + $0x28] sm:$0xff]  ;;  %s727_s2 = smov [#allocation9]  }
  0x11   :  { %62 = vst [vmem:[#allocation2 + $0x4] sm:$0xf] %v726_v0  ;;  %v65_v5 = vpack.c.bf16 %v63_v3, %v63_v3  ;;  %v582_v6 = vld [vmem:[#allocation6 + $0x78] sm:$0xff]  ;;  %v66_v7 = vpack.c.bf16 %v64_v4, %v64_v4  ;;  %v581_v9 = vld [vmem:[#allocation6 + $0x70] sm:$0xff]  ;;  %v580_v10 = vld [vmem:[#allocation6 + $0x68] sm:$0xff]  ;;  %s418_s29 = sshll.u32 %s727_s2, 4  ;;  %s419_s29 = int_to_ptr.vmem [resolvable:$true] %s418_s29 }
  0x12   :  { %226 = vmatpush.bf16.msra.mxu1 %v582_v6  ;;  %v571_v11 = vld [vmem:[#allocation6 + $0x20] sm:$0xff]  ;;  %v570_v13 = vld [vmem:[#allocation6 + $0x18] sm:$0xff]  ;;  %v569_v15 = vld [vmem:[#allocation6 + $0x10] sm:$0xff]  ;;  %s420_s5 = sshll.u32 %s769_s3, 4  ;;  %s421_s5 = int_to_ptr.hbm [resolvable:$true] %s420_s5 }
  0x13   :  { %68 = vst.msk [vmem:[#allocation2] sm:$0xf] %vm67_vm0, %v65_v5  ;;  %v579_v12 = vld [vmem:[#allocation6 + $0x60] sm:$0xff]  ;;  %v578_v14 = vld [vmem:[#allocation6 + $0x58] sm:$0xff]  ;;  %v568_v16 = vld [vmem:[#allocation6 + $0x8] sm:$0xff] }
  0x14   :  { %145 = vmatpush.bf16.msra.mxu0 %v573_v2  ;;  %69 = vst.msk [vmem:[#allocation2 + $0x4] sm:$0xf] %vm67_vm0, %v66_v7  ;;  %v567_v17 = vld [vmem:[#allocation6] sm:$0xff]  ;;  %v577_v19 = vld [vmem:[#allocation6 + $0x50] sm:$0xff]  ;;  %v576_v20 = vld [vmem:[#allocation6 + $0x48] sm:$0xff] }
  0x15   :  { %v575_v21 = vld [vmem:[#allocation6 + $0x40] sm:$0xff]  ;;  %v590_v22 = vld [vmem:[#allocation6 + $0xb8] sm:$0xff]  ;;  %v589_v23 = vld [vmem:[#allocation6 + $0xb0] sm:$0xff] }
  0x16   :  { %227 = vmatpush.bf16.msra.mxu1 %v581_v9  ;;  %310 = vmatpush.bf16.msra.mxu2 %v590_v22  ;;  %v588_v24 = vld [vmem:[#allocation6 + $0xa8] sm:$0xff]  ;;  %v587_v25 = vld [vmem:[#allocation6 + $0xa0] sm:$0xff]  ;;  %v586_v32 = vld [vmem:[#allocation6 + $0x98] sm:$0xff] }
  0x17   :  { %v613_v27 = vld [vmem:[#allocation8] ss:$0 sm:$0xff]  ;;  %v585_v33 = vld [vmem:[#allocation6 + $0x90] sm:$0xff]  ;;  %v584_v34 = vld [vmem:[#allocation6 + $0x88] sm:$0xff] }
  0x18   :  { %146 = vmatpush.bf16.msra.mxu0 %v572_v8  ;;  %v583_v35 = vld [vmem:[#allocation6 + $0x80] sm:$0xff]  ;;  %v598_v36 = vld [vmem:[#allocation6 + $0xf8] sm:$0xff]  ;;  %v597_v37 = vld [vmem:[#allocation6 + $0xf0] sm:$0xff] }
  0x19   :  { %394 = vmatpush.bf16.msra.mxu3 %v598_v36  ;;  %v596_v38 = vld [vmem:[#allocation6 + $0xe8] sm:$0xff]  ;;  %v595_v39 = vld [vmem:[#allocation6 + $0xe0] sm:$0xff]  ;;  %v594_v48 = vld [vmem:[#allocation6 + $0xd8] sm:$0xff] }
  0x1a   :  { %228 = vmatpush.bf16.msra.mxu1 %v580_v10  ;;  %311 = vmatpush.bf16.msra.mxu2 %v589_v23  ;;  %v614_v41 = vld [vmem:[#allocation8 + $0x1] ss:$0 sm:$0xff]  ;;  %v593_v49 = vld [vmem:[#allocation6 + $0xd0] sm:$0xff]  ;;  %v592_v50 = vld [vmem:[#allocation6 + $0xc8] sm:$0xff] }
  0x1b   :  { %v566_v18 = vld [vmem:[#allocation2] sm:$0xff]  ;;  %v591_v51 = vld [vmem:[#allocation6 + $0xc0] sm:$0xff] }
  0x1c   :  { %147 = vmatpush.bf16.msra.mxu0 %v571_v11  ;;  %v615_v53 = vld [vmem:[#allocation8 + $0x2] ss:$0 sm:$0xff]  ;;  %v616_v61 = vld [vmem:[#allocation8 + $0x3] ss:$0 sm:$0xff] }
  0x1d   :  { %395 = vmatpush.bf16.msra.mxu3 %v597_v37 }
  0x1e   :  { %229 = vmatpush.bf16.msra.mxu1 %v579_v12  ;;  %312 = vmatpush.bf16.msra.mxu2 %v588_v24 }
  0x20   :  { %148 = vmatpush.bf16.msra.mxu0 %v570_v13 }
  0x21   :  { %396 = vmatpush.bf16.msra.mxu3 %v596_v38 }
  0x22   :  { %230 = vmatpush.bf16.msra.mxu1 %v578_v14  ;;  %313 = vmatpush.bf16.msra.mxu2 %v587_v25 }
  0x24   :  { %149 = vmatpush.bf16.msra.mxu0 %v569_v15 }
  0x25   :  { %397 = vmatpush.bf16.msra.mxu3 %v595_v39 }
  0x26   :  { %231 = vmatpush.bf16.msra.mxu1 %v577_v19  ;;  %314 = vmatpush.bf16.msra.mxu2 %v586_v32 }
  0x28   :  { %150 = vmatpush.bf16.msra.mxu0 %v568_v16 }
  0x29   :  { %398 = vmatpush.bf16.msra.mxu3 %v594_v48 }
  0x2a   :  { %232 = vmatpush.bf16.msra.mxu1 %v576_v20  ;;  %315 = vmatpush.bf16.msra.mxu2 %v585_v33 }
  0x2c   :  { %151 = vmatpush.bf16.msra.mxu0 %v567_v17 }
  0x2d   :  { %399 = vmatpush.bf16.msra.mxu3 %v593_v49 }
  0x2e   :  { %233 = vmatpush.bf16.msra.mxu1 %v575_v21  ;;  %316 = vmatpush.bf16.msra.mxu2 %v584_v34 }
  0x2f   :  { %152 = vmatmul.bf16.vlgmr.msra.gmra.mxu0 %v566_v18 }
  0x31   :  { %400 = vmatpush.bf16.msra.mxu3 %v592_v50 }
  0x32   :  { %317 = vmatpush.bf16.msra.mxu2 %v583_v35 }
  0x35   :  { %401 = vmatpush.bf16.msra.mxu3 %v591_v51 }
  0xac   :  { %v153_v26 = vpop.f32.mrf.mxu0 }
  0xad   :  { %v154_v29 = vadd.f32 %v613_v27, %v153_v26 }
  0xb4   :  { %v155_v28 = vpop.f32.mrf.mxu0 }
  0xb5   :  { %v156_v30 = vadd.f32 %v613_v27, %v155_v28 }
  0xb7   :  { %v158_v31 = vpack.c.bf16 %v156_v30, %v154_v29 }
  0xb9   :  { %234 = vmatmul.bf16.vlgmr.msra.gmra.mxu1 %v158_v31 }
 0x136   :  { %v235_v40 = vpop.f32.mrf.mxu1 }
 0x137   :  { %v236_v42 = vadd.f32 %v614_v41, %v235_v40 }
 0x139   :  { %v240_v45 = vmax.f32 %v236_v42, 0.0 }
 0x13e   :  { %v237_v43 = vpop.f32.mrf.mxu1 }
 0x13f   :  { %v238_v44 = vadd.f32 %v614_v41, %v237_v43 }
 0x141   :  { %v241_v46 = vmax.f32 %v238_v44, 0.0 }
 0x143   :  { %v242_v47 = vpack.c.bf16 %v241_v46, %v240_v45 }
 0x145   :  { %318 = vmatmul.bf16.vlgmr.msra.gmra.mxu2 %v242_v47 }
 0x1c8   :  { %v319_v52 = vpop.f32.mrf.mxu2 }
 0x1c9   :  { %v320_v54 = vadd.f32 %v615_v53, %v319_v52 }
 0x1cb   :  { %v324_v57 = vmax.f32 %v320_v54, 0.0 }
 0x1d0   :  { %v321_v55 = vpop.f32.mrf.mxu2 }
 0x1d1   :  { %v322_v56 = vadd.f32 %v615_v53, %v321_v55 }
 0x1d3   :  { %v325_v58 = vmax.f32 %v322_v56, 0.0 }
 0x1d5   :  { %v326_v59 = vpack.c.bf16 %v325_v58, %v324_v57 }
 0x1d7   :  { %402 = vmatmul.bf16.vlgmr.msra.gmra.mxu3 %v326_v59 }
 0x25a   :  { %v403_v60 = vpop.f32.mrf.mxu3 }
 0x25b   :  { %v404_v62 = vadd.f32 %v616_v61, %v403_v60 }
 0x25d   :  { %v408_v1 = vmax.f32 %v404_v62, 0.0 }
 0x262   :  { %v405_v63 = vpop.f32.mrf.mxu3 }
 0x263   :  { %v406_v0 = vadd.f32 %v616_v61, %v405_v63 }
 0x265   :  { %v409_v2 = vmax.f32 %v406_v0, 0.0 }
 0x267   :  { %v602_v3 = vpack.c.bf16 %v409_v2, %v408_v1 }
 0x269   :  { %603 = vst [vmem:[#allocation9] sm:$0xff] %v602_v3  }
 0x26a   :  { %426 = dma.vmem_to_hbm [thread:$0]  %s419_s29, 128, %s421_s5, [#allocation5], %s720_s20, %s720_s20, %s721_s21  }
 0x26b   :  { %717 = dma.done.wait [#allocation5], 128  }
 0x26c   :  { %718 = vsyncadd [#allocation5], 4294967168 }
 0x26d   :  { %431 = vsyncpa [#allocation4], 1 }
 0x26e   :  { %432 = vsyncpa [#allocation7], 1 }
 0x26f   :  { %433 = vsyncpa [#allocation5], 1 }

</bundles_post_ra>
